<compile_context>
chip_gen: v5e
topology: v5e:2x2
jax: 0.10.0
libtpu: 0.0.40
codegen_flags: <defaults>
</compile_context>

<pallas_src>
import functools

import jax
import jax.numpy as jnp
from jax.experimental import pallas as pl
from jax.experimental.pallas import tpu as pltpu


def _vmem_capacity_bytes():
    """Physical VMEM per TensorCore; conservative v7x default if query fails."""
    try:
        return int(pltpu.get_tpu_info().vmem_capacity_bytes)
    except Exception:
        return 64 * 1024 * 1024  # v7x has the smallest VMEM (64 MiB / TC)


def _pick_row_tile(rows, features, itemsize):
    """Largest row tile whose pipeline buffers fit the VMEM budget."""
    vmem_cap = _vmem_capacity_bytes()
    # Budget for the pipeline: (in + out) x double buffer = 4 live tiles.
    budget = min(vmem_cap // 2, 48 * 1024 * 1024)
    bytes_per_row_all_buffers = 4 * features * itemsize

    # Sublane-friendly row multiple: 8 for f32, 16 for bf16, 32 for int8/fp8.
    sub = max(8, 8 * max(1, 4 // max(1, itemsize)))

    tile = budget // max(1, bytes_per_row_all_buffers)
    tile = max(sub, (tile // sub) * sub)
    tile = min(tile, 2048)

    # Don't exceed the (rounded-up) row count, and keep the grid at >= 2 steps
    # when possible so v7x can shard rows across its 2 TensorCores.
    rows_up = ((rows + sub - 1) // sub) * sub
    tile = min(tile, rows_up)
    if rows_up > sub:
        half = ((-(-rows_up // 2) + sub - 1) // sub) * sub
        tile = min(tile, max(sub, half))
    return int(tile)


def _layernorm_kernel(x_ref, ab_ref, o_ref, *, eps):
    x = x_ref[...].astype(jnp.float32)                        # (ROW_TILE, F)
    n = x.shape[-1]
    mean = jnp.mean(x, axis=-1, keepdims=True)                 # (ROW_TILE, 1)
    diff = x - mean
    # torch.std defaults to unbiased (ddof=1): divide by (N - 1). Guard N == 1.
    denom = jnp.float32(n - 1 if n > 1 else 1)
    var = jnp.sum(diff * diff, axis=-1, keepdims=True) / denom
    std = jnp.sqrt(var)
    # One reciprocal per row, reused across the feature dim.
    # (approx=False keeps full precision at the 1e-5 tolerance.)
    inv = pl.reciprocal(std + jnp.float32(eps), approx=False)  # (ROW_TILE, 1)
    a = ab_ref[0:1, :].astype(jnp.float32)                     # (1, F)
    b = ab_ref[1:2, :].astype(jnp.float32)                     # (1, F)
    o_ref[...] = (diff * inv * a + b).astype(o_ref.dtype)


def layer_norm(x, a_2, b_2, eps=1e-6, row_tile=None):
    """x: (..., features); a_2, b_2: (features,)."""
    orig_shape = x.shape
    features = orig_shape[-1]
    rows = 1
    for d in orig_shape[:-1]:
        rows *= d
    x2 = x.reshape(rows, features)
    # Fuse the two parameter vectors into one resident (2, F) tile.
    ab = jnp.stack([a_2.reshape(features), b_2.reshape(features)], axis=0)

    itemsize = jnp.dtype(x.dtype).itemsize
    if row_tile is None:
        row_tile = _pick_row_tile(rows, features, itemsize)

    grid = pl.cdiv(rows, row_tile)

    # Scoped-VMEM limit: enough for the pipeline buffers + headroom, but safely
    # below physical VMEM (64 MiB on v7x, 128 MiB on v5e/v6e).
    buf_bytes = 4 * row_tile * features * itemsize
    vmem_cap = _vmem_capacity_bytes()
    vmem_limit = max(32 * 1024 * 1024, buf_bytes + 16 * 1024 * 1024)
    vmem_limit = int(min(vmem_limit, vmem_cap - 8 * 1024 * 1024))
    vmem_limit = max(vmem_limit, 16 * 1024 * 1024)

    kernel = functools.partial(_layernorm_kernel, eps=eps)
    out = pl.pallas_call(
        kernel,
        out_shape=jax.ShapeDtypeStruct((rows, features), x.dtype),
        grid_spec=pltpu.PrefetchScalarGridSpec(
            num_scalar_prefetch=0,
            grid=(grid,),
            in_specs=[
                pl.BlockSpec((row_tile, features), lambda i: (i, 0)),
                pl.BlockSpec((2, features), lambda i: (0, 0)),  # resident params
            ],
            out_specs=pl.BlockSpec((row_tile, features), lambda i: (i, 0)),
        ),
        compiler_params=pltpu.CompilerParams(
            dimension_semantics=("parallel",),
            vmem_limit_bytes=vmem_limit,
        ),
    )(x2, ab)

    return out.reshape(orig_shape)


if __name__ == "__main__":
    key = jax.random.PRNGKey(0)
    batch, seq, hidden = 2, 8, 32  # features = hidden = 32

    x = jax.random.normal(key, (batch, seq, hidden), dtype=jnp.float32)
    # Deterministic parameter init matching nn.Parameter(torch.ones/zeros(features))
    a_2 = jnp.ones((hidden,), dtype=jnp.float32)
    b_2 = jnp.zeros((hidden,), dtype=jnp.float32)

    out = layer_norm(x, a_2, b_2, eps=1e-6)
    out = jax.block_until_ready(out)

    # Reference check in plain JAX (same semantics as the PyTorch module:
    # unbiased std, eps added to std, affine scale/shift).
    mean = jnp.mean(x, axis=-1, keepdims=True)
    std = jnp.sqrt(jnp.sum((x - mean) ** 2, axis=-1, keepdims=True) / (hidden - 1))
    ref = a_2 * (x - mean) / (std + 1e-6) + b_2
    assert jnp.allclose(out, ref, atol=1e-5, rtol=1e-5), "mismatch vs reference"

    print("KERNEL_OK")
</pallas_src>

<mosaic_0001>
module attributes {stable_mosaic.version = 11 : i64} {
  func.func @_layernorm_kernel(%arg0: i32, %arg1: memref<8x32xf32, #tpu.memory_space<vmem>>, %arg2: memref<2x32xf32, #tpu.memory_space<vmem>>, %arg3: memref<8x32xf32, #tpu.memory_space<vmem>>) attributes {dimension_semantics = [#tpu.dimension_semantics<parallel>], iteration_bounds = array<i64: 2>, scalar_prefetch = 0 : i64, scratch_operands = 0 : i64, tpu.core_type = #tpu.core_type<tc>, window_params = [{transform_indices = @transform_0, window_bounds = array<i64: 8, 32>}, {pipeline_mode = #tpu.pipeline_mode<synchronous>, transform_indices = @transform_1, window_bounds = array<i64: 2, 32>}, {transform_indices = @transform_2, window_bounds = array<i64: 8, 32>}]} {
    %c0 = arith.constant 0 : index
    %c0_0 = arith.constant 0 : index
    %0 = vector.load %arg1[%c0, %c0_0] : memref<8x32xf32, #tpu.memory_space<vmem>>, vector<8x32xf32>
    %cst = arith.constant dense<0.000000e+00> : vector<8xf32>
    %1 = vector.multi_reduction <add>, %0, %cst [1] : vector<8x32xf32> to vector<8xf32>
    %2 = vector.shape_cast %1 : vector<8xf32> to vector<8x1xf32>
    %cst_1 = arith.constant 3.200000e+01 : f32
    %3 = vector.broadcast %cst_1 : f32 to vector<8x1xf32>
    %4 = arith.divf %2, %3 : vector<8x1xf32>
    %5 = vector.broadcast %4 : vector<8x1xf32> to vector<8x32xf32>
    %6 = arith.subf %0, %5 : vector<8x32xf32>
    %7 = arith.mulf %6, %6 : vector<8x32xf32>
    %cst_2 = arith.constant dense<0.000000e+00> : vector<8xf32>
    %8 = vector.multi_reduction <add>, %7, %cst_2 [1] : vector<8x32xf32> to vector<8xf32>
    %9 = vector.shape_cast %8 : vector<8xf32> to vector<8x1xf32>
    %cst_3 = arith.constant 3.100000e+01 : f32
    %10 = vector.broadcast %cst_3 : f32 to vector<8x1xf32>
    %11 = arith.divf %9, %10 : vector<8x1xf32>
    %12 = math.sqrt %11 : vector<8x1xf32>
    %cst_4 = arith.constant 9.99999997E-7 : f32
    %13 = vector.broadcast %cst_4 : f32 to vector<8x1xf32>
    %14 = arith.addf %12, %13 : vector<8x1xf32>
    %15 = tpu.reciprocal %14 : vector<8x1xf32> -> vector<8x1xf32>
    %c0_5 = arith.constant 0 : index
    %c0_6 = arith.constant 0 : index
    %16 = vector.load %arg2[%c0_5, %c0_6] : memref<2x32xf32, #tpu.memory_space<vmem>>, vector<1x32xf32>
    %c1 = arith.constant 1 : index
    %c0_7 = arith.constant 0 : index
    %17 = vector.load %arg2[%c1, %c0_7] : memref<2x32xf32, #tpu.memory_space<vmem>>, vector<1x32xf32>
    %18 = vector.broadcast %15 : vector<8x1xf32> to vector<8x32xf32>
    %19 = arith.mulf %6, %18 : vector<8x32xf32>
    %20 = vector.broadcast %16 : vector<1x32xf32> to vector<8x32xf32>
    %21 = arith.mulf %19, %20 : vector<8x32xf32>
    %22 = vector.broadcast %17 : vector<1x32xf32> to vector<8x32xf32>
    %23 = arith.addf %21, %22 : vector<8x32xf32>
    %c0_8 = arith.constant 0 : index
    %c0_9 = arith.constant 0 : index
    %24 = vector.load %arg3[%c0_8, %c0_9] : memref<8x32xf32, #tpu.memory_space<vmem>>, vector<8x32xf32>
    tpu.vector_store %arg3[%c0_8, %c0_9], %23 {strides = array<i32>} : memref<8x32xf32, #tpu.memory_space<vmem>>, vector<8x32xf32>,
    return
  }
  func.func @transform_0(%arg0: i32) -> (i32, i32) {
    %c0_i32 = arith.constant 0 : i32
    %c0_i32_0 = arith.constant 0 : i32
    return %arg0, %c0_i32 : i32, i32
  }
  func.func @transform_1(%arg0: i32) -> (i32, i32) {
    %c0_i32 = arith.constant 0 : i32
    %c0_i32_0 = arith.constant 0 : i32
    %c0_i32_1 = arith.constant 0 : i32
    return %c0_i32, %c0_i32_0 : i32, i32
  }
  func.func @transform_2(%arg0: i32) -> (i32, i32) {
    %c0_i32 = arith.constant 0 : i32
    %c0_i32_0 = arith.constant 0 : i32
    return %arg0, %c0_i32 : i32, i32
  }
}

</mosaic_0001>

<bundles_post_ra>
// kernel: tpu_custom_call.1
= control target key start
LH: loop header
LB: loop body
LE: loop exit
PB: predicated region body
PF: predicated region fallthrough
CT: control target
= control target key end

     0   :  { %7 = vsyncpa [#allocation3], 0  ;;  %s711_s0 = inlined_call_operand.hbm [shape: f32[16,32], index: 0, kind: input, shape index: {}]   ;;  %s712_s1 = inlined_call_operand.hbm [shape: f32[2,32], index: 1, kind: input, shape index: {}]   ;;  %s713_s2 = inlined_call_operand.hbm [shape: f32[16,32], index: 2, kind: output, shape index: {}]  }
   0x1   :  { %9 = vsyncpa [#allocation3 + $0x1], 0 }
   0x2   :  { %10 = vsyncpa [#allocation6], 0 }
   0x3   :  { %11 = vsyncpa [#allocation4], 0 }
   0x4   :  { %13 = vsyncpa [#allocation4 + $0x1], 0  ;;  %s566_s9 = smov 0   ;;  %s568_s10 = smov 0  }
   0x5   :  { %s570_s11 = smov 0   ;;  %s572_s12 = smov 0  }
   0x6 LB: > { %s587_s13 = sadd.s32 4294967295, %s546_s12   ;;  %s333_s14 = sadd.s32 4294967294, %s546_s12   ;;  %s546_s12 = sphi %s572_s12, %s723_s12   ;;  %s542_s11 = sphi %s570_s11, %s722_s11   ;;  %s538_s10 = sphi %s568_s10, %s721_s10   ;;  %s534_s9 = sphi %s566_s9, %s720_s9  }
   0x7   : > { %p39_p0 = scmp.ne.s32.totalorder %s538_s10, %s534_s9  ;;  %p40_p1 = scmp.eq.s32.totalorder %s587_s13, 0 }
   0x8   : > { %p84_p2 = scmp.eq.s32.totalorder %s587_s13, 1  ;;  %p90_p3 = scmp.eq.s32.totalorder %s333_s14, 1 }
   0x9   : > { %p596_p4 = por %p40_p1, %p39_p0  ;;  %p334_p5 = scmp.ge.s32.totalorder %s546_s12, 1 }
   0xa   : > { %p601_p6 = por %p90_p3, %p39_p0  ;;  %p97_p7 = scmp.lt.s32.totalorder %s546_s12, 3 }
   0xb   : > { %s109_s19 = sshll.u32 %s712_s1, 4  ;;  %s548_s21 = smov [#allocation5]   ;;  %s110_s19 = int_to_ptr.hbm [resolvable:$true] %s109_s19 }
   0xc   : > { %p609_p8 = pnand %p334_p5, %p97_p7  ;;  %s111_s22 = sshll.u32 %s548_s21, 4  ;;  %s112_s22 = int_to_ptr.vmem [resolvable:$true] %s111_s22 }
   0xd   : > { %s619_s23 = sadd.s32 1, %s546_s12   ;;  %s26_s24 = sadd.s32 1, %s542_s11 }
   0xe   : > { %p355_p10 = pneg %p609_p8  ;;  %s23_s25 = ssub.s32 %s546_s12, %s619_s23 }
   0xf   : > { %p24_p12 = scmp.eq.s32.totalorder %s23_s25, 0  ;;  %p33_p13 = scmp.ne.s32.totalorder %s542_s11, %s538_s10 }
  0x10   : > { %p356_p11 = pnand %p355_p10, %p40_p1  ;;  %p34_p0 = scmp.eq.s32.totalorder %s546_s12, 0 }
  0x11   : > { %s628_s26 = scalar_select %p24_p12, %s542_s11, %s26_s24  }
  0x12   : > { %358 = dma.hbm_to_vmem [thread:$0]  (!%p356_p11), %s110_s19, 32, %s112_s22, [#allocation6]  }
  0x13   : > { %p632_p3 = por %p84_p2, %p33_p13  ;;  %p368_p5 = scmp.lt.s32.totalorder %s546_s12, 2 }
  0x14   : > { %s122_s28 = sand.u32 1, %s542_s11   ;;  %s338_s29 = sshll.u32 %s546_s12, 3 }
  0x15   : > { %p35_p7 = por %p34_p0, %p33_p13  ;;  %s337_s30 = sshll.u32 %s122_s28, 3 }
  0x16   : > { %s130_s5 = scalar_lea.hbm %s711_s0, %s338_s29  ;;  %s126_s7 = scalar_lea.vmem [#allocation2], %s337_s30 }
  0x17   : > { %s132_s6 = sshll.u32 %s130_s5, 4  ;;  %s134_s8 = sshll.u32 %s126_s7, 4  ;;  %s133_s6 = int_to_ptr.hbm [resolvable:$true] %s132_s6  ;;  %s135_s8 = int_to_ptr.vmem [resolvable:$true] %s134_s8 }
  0x18   : > { %p642_p10 = pnand %p368_p5, %p35_p7  ;;  %s123_s17 = scalar_lea.sflag [#allocation3], %s122_s28 }
  0x19   : > { %s446_s18 = sshra.s32 %s133_s6, 4  ;;  %s453_s24 = scalar_lea.hbm %s711_s0, 16  ;;  %s447_s18 = int_to_ptr.hbm [resolvable:$true] %s446_s18 }
  0x1a   : > { %s448_s19 = scalar_lea.hbm %s447_s18, 8  ;;  %p450_p11 = pneg %p642_p10 }
  0x1b   : > { %p449_p2 = scmp.ne.s32.totalorder %s447_s18, %s448_s19  ;;  %p454_p0 = scmp.lt.s32.totalorder %s447_s18, %s711_s0 }
  0x1c   : > { %p455_p5 = scmp.lt.s32.totalorder %s453_s24, %s448_s19 }
  0x1d   : > { %p451_p12 = pnand %p450_p11, %p449_p2 }
  0x1e   : > { %p456_p7 = por %p455_p5, %p454_p0 }
  0x1f   : > { %p452_p13 = pneg %p451_p12 }
  0x21   : > { %p457_p9 = pnand %p456_p7, %p452_p13 }
  0x23   : > { %460 = shalt.err (!%p457_p9)
}
  0x24   : > { %362 = dma.hbm_to_vmem [thread:$0]  (!%p642_p10), %s133_s6, 128, %s135_s8, %s123_s17  }
  0x25   : > { %143 = sbr.rel (%p609_p8) target bundleno = 337 (0x151), region = 28  ;;  %s659_s28 = sand.u32 (!%p609_p8), 1, %s538_s10  }
  0x26   : > { %s340_s30 = sshll.u32 (!%p609_p8), %s659_s28, 3  ;;  %s146_s3 = scalar_lea.sflag (!%p609_p8), [#allocation3], %s659_s28 }
  0x27   : > { %s149_s4 = scalar_lea.vmem (!%p609_p8), [#allocation2], %s340_s30 }
  0x2a   : > { %521 = dma.done.wait (%p596_p4), %s146_s3, 128  }
  0x2b   : > { %523 = vsyncadd (%p596_p4), %s146_s3, 4294967168 }
  0x2c   : > { %525 = dma.done.wait (%p40_p1), [#allocation6], 32  }
  0x2d   : > { %527 = vsyncadd (%p40_p1), [#allocation6], 4294967264  ;;  %vm177_vm0 = vcmask 261120   ;;  %v176_v0 = vld [vmem:[%s149_s4] sm:$0xff]  ;;  %v549_v2 = vmov 32.0   ;;  %v550_v14 = vmov 31.0  }
  0x2e   : > { %v178_v1 = vsel %vm177_vm0, %v176_v0, 0.0  ;;  %408 = vrcp.f32 %v549_v2  ;;  %s344_s15 = sshll.u32 %s587_s13, 3  ;;  %v406_v43 = vld [vmem:[#allocation5] ss:$0 sm:$0xff]  ;;  %v407_v46 = vld [vmem:[#allocation5 + $0x1] ss:$0 sm:$0xff] }
  0x2f   : > { %179 = vadd.xlane.f32.xlu0 %v178_v1  ;;  %410 = vrcp.f32 %v550_v14  ;;  %s248_s6 = scalar_lea.hbm %s713_s2, %s344_s15  ;;  %s175_s7 = scalar_lea.vmem [#allocation7], %s340_s30 }
  0x30   : > { %s250_s8 = sshll.u32 %s175_s7, 4  ;;  %s252_s13 = sshll.u32 %s248_s6, 4  ;;  %s251_s8 = int_to_ptr.vmem [resolvable:$true] %s250_s8  ;;  %s253_s13 = int_to_ptr.hbm [resolvable:$true] %s252_s13 }
  0x31   : > { %s238_s14 = scalar_lea.sflag [#allocation4], %s659_s28  ;;  %s490_s17 = sshra.s32 %s253_s13, 4  ;;  %s491_s17 = int_to_ptr.hbm [resolvable:$true] %s490_s17 }
  0x32   : > { %s492_s18 = scalar_lea.hbm %s491_s17, 8  ;;  %s496_s22 = scalar_lea.hbm %s713_s2, 16 }
  0x33   : > { %p493_p1 = scmp.ne.s32.totalorder %s491_s17, %s492_s18  ;;  %p497_p9 = scmp.lt.s32.totalorder %s491_s17, %s713_s2 }
  0x34   : > { %v409_v3 = vpop.eup %408  ;;  %p498_p10 = scmp.lt.s32.totalorder %s496_s22, %s492_s18 }
  0x35   : > { %v182_v4 = vmul.f32 32.0, %v409_v3  ;;  %vm186_vm1 = vweird.f32 %v409_v3  ;;  %v411_v15 = vpop.eup %410  ;;  %p494_p4 = pnand %p493_p1, %p632_p3 }
  0x36   : > { %v195_v16 = vmul.f32 31.0, %v411_v15  ;;  %vm199_vm2 = vweird.f32 %v411_v15  ;;  %p499_p2 = por %p498_p10, %p497_p9 }
  0x37   : > { %v183_v5 = vsub.f32 1.0, %v182_v4  ;;  %p495_p8 = pneg %p494_p4 }
  0x38   : > { %v196_v17 = vsub.f32 1.0, %v195_v16 }
  0x39   : > { %v184_v6 = vmul.f32 %v409_v3, %v183_v5  ;;  %p500_p11 = pnand %p499_p2, %p495_p8 }
  0x3a   : > { %v197_v18 = vmul.f32 %v411_v15, %v196_v17 }
  0x3b   : > { %v185_v7 = vadd.f32 %v409_v3, %v184_v6 }
  0x3c   : > { %v198_v19 = vadd.f32 %v411_v15, %v197_v18 }
  0x3d   : > { %v187_v8 = vsel %vm186_vm1, %v409_v3, %v185_v7 }
  0x3e   : > { %v200_v20 = vsel %vm199_vm2, %v411_v15, %v198_v19 }
  0xa2   : > { %v180_v9 = vpop.xlane.xlu0 %179 }
  0xa3   : > { %v188_v10 = vmul.f32 %v187_v8, %v180_v9 }
  0xa5   : > { %v189_v11 = vsub.f32 %v176_v0, %v188_v10 }
  0xa7   : > { %v190_v12 = vmul.f32 %v189_v11, %v189_v11 }
  0xa9   : > { %v191_v13 = vsel %vm177_vm0, %v190_v12, 0.0 }
  0xaa   : > { %192 = vadd.xlane.f32.xlu0 %v191_v13 }
 0x11d   : > { %v193_v21 = vpop.xlane.xlu0 %192 }
 0x11e   : > { %v201_v22 = vmul.f32 %v200_v20, %v193_v21 }
 0x120   : > { %412 = vrsqrt.f32 %v201_v22  ;;  %vm209_vm3 = vcmp.eq.f32.partialorder %v201_v22, inf  ;;  %v212_v30 = vand.u32 2147483648, %v201_v22  ;;  %vm211_vm4 = vcmp.eq.f32.partialorder %v201_v22, 0.0 }
 0x126   : > { %v413_v23 = vpop.eup %412 }
 0x127   : > { %v203_v24 = vmul.f32 %v413_v23, %v201_v22 }
 0x129   : > { %v204_v25 = vmul.f32 %v413_v23, %v203_v24 }
 0x12b   : > { %v205_v26 = vmul.f32 0.5, %v204_v25 }
 0x12d   : > { %v206_v27 = vsub.f32 1.5, %v205_v26 }
 0x12f   : > { %v207_v28 = vmul.f32 %v413_v23, %v206_v27 }
 0x131   : > { %v208_v29 = vmul.f32 %v207_v28, %v201_v22 }
 0x133   : > { %v210_v31 = vsel %vm209_vm3, %v201_v22, %v208_v29 }
 0x134   : > { %v213_v32 = vsel %vm211_vm4, %v212_v30, %v210_v31 }
 0x135   : > { %v214_v33 = vadd.f32 1e-06, %v213_v32 }
 0x137   : > { %414 = vrcp.f32 %v214_v33  ;;  %v226_v37 = vand.u32 2147483648, %v214_v33  ;;  %v224_v39 = vand.u32 2147483647, %v214_v33  ;;  %vm220_vm6 = vweird.f32 %v214_v33 }
 0x139   : > { %v227_v41 = vor.u32 1.1754944e-38, %v226_v37  ;;  %vm225_vm8 = vcmp.eq.f32.partialorder %v224_v39, 8.507059e+37 }
 0x13d   : > { %v415_v34 = vpop.eup %414 }
 0x13e   : > { %v216_v35 = vmul.f32 %v415_v34, %v214_v33  ;;  %vm221_vm5 = vweird.f32 %v415_v34 }
 0x13f   : > { %vm222_vm7 = vmor %vm220_vm6, %vm221_vm5 }
 0x140   : > { %v217_v36 = vsub.f32 1.0, %v216_v35 }
 0x142   : > { %v218_v38 = vmul.f32 %v415_v34, %v217_v36 }
 0x144   : > { %v219_v40 = vadd.f32 %v415_v34, %v218_v38 }
 0x146   : > { %v223_v42 = vsel %vm222_vm7, %v415_v34, %v219_v40 }
 0x147   : > { %v228_v44 = vsel %vm225_vm8, %v227_v41, %v223_v42 }
 0x148   : > { %v231_v45 = vmul.f32 %v228_v44, %v189_v11 }
 0x14a   : > { %v233_v47 = vmul.f32 %v406_v43, %v231_v45 }
 0x14c   : > { %v235_v48 = vadd.f32 %v407_v46, %v233_v47 }
 0x14e   : > { %236 = vst.msk [vmem:[%s175_s7] sm:$0xff] %vm177_vm0, %v235_v48 }
 0x14f   : > { %503 = shalt.err (!%p500_p11)
}
 0x150   : > { %353 = dma.vmem_to_hbm [thread:$0]  (%p632_p3), %s251_s8, 128, %s253_s13, %s238_s14  }
 0x151 PF: > { %s264_s29 = sand.u32 1, %s534_s9   ;;  %p719_p12 = scmp.ge.s32.totalorder %s546_s12, 2 }
 0x152   : > { %s265_s28 = scalar_lea.sflag [#allocation4], %s264_s29 }
 0x153   : > { %p364_p13 = pnand %p719_p12, %p601_p6 }
 0x155   : > { %p365_p0 = pneg %p364_p13 }
 0x157   : > { %529 = dma.done.wait (%p365_p0), %s265_s28, 128  }
 0x158   : > { %531 = vsyncadd (%p365_p0), %s265_s28, 4294967168  ;;  %p16_p5 = scmp.ge.s32.totalorder %s619_s23, 4   ;;  %s720_s9 = smov %s538_s10 }
 0x159   : > { %s721_s10 = smov %s542_s11  ;;  %s722_s11 = smov %s628_s26 }
 0x15a   : > { %s723_s12 = smov %s619_s23  ;;  %18 = sbr.rel (!%p16_p5) target bundleno = 6 (0x6), region = 77 }
 0x15f   :  { %271 = vsyncpa [#allocation3], 1 }
 0x160   :  { %273 = vsyncpa [#allocation3 + $0x1], 1 }
 0x161   :  { %274 = vsyncpa [#allocation6], 1 }
 0x162   :  { %275 = vsyncpa [#allocation4], 1 }
 0x163   :  { %277 = vsyncpa [#allocation4 + $0x1], 1 }

</bundles_post_ra>
